<compile_context>
chip_gen: v6e
topology: v6e:2x2x1
jax: 0.10.0
libtpu: 0.0.40
codegen_flags: <defaults>
</compile_context>

<pallas_src>
import functools

import jax
import jax.numpy as jnp
from jax.experimental import pallas as pl
from jax.experimental.pallas import tpu as pltpu


_LANES = 128
# ~2 MiB per block -> with double-buffered in + out that's ~8 MiB of VMEM,
# comfortably inside the default scoped limits on v5e (16 MiB), v6e (32 MiB)
# and v7x (32 MiB of 64 MiB physical).  >=512 rows per block amortizes the
# ~0.35 us/step grid overhead (measured ~85% of HBM roofline at tile 512).
_TARGET_BLOCK_BYTES = 2 * 1024 * 1024


# ----------------------------------------------------------------------------
# Pallas kernel: out = (-lambda) * g    (lambda baked in as a static constant)
# ----------------------------------------------------------------------------
def _neg_scale_kernel(neg_lam, g_ref, o_ref):
    # Promote to f32 for the scale (keeps lambda at full precision for
    # bf16/fp8 gradients), then cast back.  The VPU mul is hidden under DMA.
    o_ref[...] = (neg_lam * g_ref[...].astype(jnp.float32)).astype(o_ref.dtype)


# ----------------------------------------------------------------------------
# Layout helpers: flatten to a wide, lane-dense 2-D slab (no copy when the
# element count divides a multiple of 128 — the overwhelmingly common case).
# ----------------------------------------------------------------------------
def _choose_cols(n):
    """Widest lane-dense column count (multiple of 128) that divides n."""
    for c in (2048, 1024, 512, 256, 128):
        if n % c == 0:
            return c
    return None


def _run_neg_scale(g, lambda_):
    shape, dtype = g.shape, g.dtype
    flat = g.reshape(-1)
    n = flat.shape[0]

    cols = _choose_cols(n)
    pad = 0
    if cols is None:
        # Rare fallback: element count not a multiple of 128 — pad the tail.
        cols = _LANES
        pad = (-n) % cols
        flat = jnp.concatenate([flat, jnp.zeros((pad,), dtype=dtype)])

    slab = flat.reshape(-1, cols)
    rows = slab.shape[0]

    # Row-tile sized for ~2 MiB blocks; multiple of 8 (sublane) unless the
    # whole slab is smaller than one block, in which case a single full block
    # (block_shape == array dims) is used.
    tr = max(8, _TARGET_BLOCK_BYTES // (cols * slab.dtype.itemsize))
    tr = (tr // 8) * 8
    if tr >= rows:
        tr = rows
    grid = (pl.cdiv(rows, tr),)

    kernel = functools.partial(_neg_scale_kernel, float(-lambda_))

    out_slab = pl.pallas_call(
        kernel,
        out_shape=jax.ShapeDtypeStruct(slab.shape, slab.dtype),
        grid=grid,
        in_specs=[pl.BlockSpec((tr, cols), lambda i: (i, 0))],
        out_specs=pl.BlockSpec((tr, cols), lambda i: (i, 0)),
        compiler_params=pltpu.CompilerParams(
            dimension_semantics=("parallel",)),
    )(slab)

    flat_out = out_slab.reshape(-1)
    if pad:
        flat_out = flat_out[:n]
    return flat_out.reshape(shape)


# ----------------------------------------------------------------------------
# GradientReversal: forward = identity (free), backward = -lambda * grads
# ----------------------------------------------------------------------------
@functools.partial(jax.custom_vjp, nondiff_argnums=(1,))
def gradient_reversal(x, lambda_=1.0):
    # Forward is the identity; no copy is needed (immutable arrays).
    return x


def _grl_fwd(x, lambda_):
    return x, None


def _grl_bwd(lambda_, _, g):
    return (_run_neg_scale(g, lambda_),)


gradient_reversal.defvjp(_grl_fwd, _grl_bwd)


class GradientReversal:
    """JAX/Pallas equivalent of the PyTorch GradientReversal module."""

    def __init__(self, lambda_=1.0):
        self.lambda_ = float(lambda_)

    def __call__(self, x):
        return gradient_reversal(x, self.lambda_)


# ----------------------------------------------------------------------------
# Demo
# ----------------------------------------------------------------------------
if __name__ == "__main__":
    key = jax.random.PRNGKey(0)
    # NCHW input, small shape consistent with a conv-feature map.
    x = jax.random.normal(key, (2, 4, 16, 16), dtype=jnp.float32)

    grl = GradientReversal(lambda_=1.0)

    # Forward: exact identity.
    y = jax.block_until_ready(grl(x))
    assert y.shape == x.shape and y.dtype == x.dtype
    assert bool(jnp.allclose(y, x)), "forward is not identity"

    # Backward: upstream grads scaled by -lambda (runs the Pallas kernel).
    def loss_fn(inp):
        return jnp.sum(grl(inp) * 2.0)

    g = jax.block_until_ready(jax.grad(loss_fn)(x))
    expected = -1.0 * jnp.full_like(x, 2.0)
    assert bool(jnp.allclose(g, expected)), "backward is not -lambda * grads"

    # Also exercise a non-trivially-tiled size (multiple row blocks).
    x_big = jax.random.normal(key, (8, 64, 32, 32), dtype=jnp.float32)
    g_big = jax.block_until_ready(jax.grad(lambda a: jnp.sum(grl(a)))(x_big))
    assert bool(jnp.allclose(g_big, -jnp.ones_like(x_big))), "tiled backward wrong"

    print("KERNEL_OK")
</pallas_src>

<mosaic_0001>
module attributes {stable_mosaic.version = 11 : i64} {
  func.func @_neg_scale_kernel(%arg0: i32, %arg1: memref<1x2048xf32, #tpu.memory_space<vmem>>, %arg2: memref<1x2048xf32, #tpu.memory_space<vmem>>) attributes {dimension_semantics = [#tpu.dimension_semantics<parallel>], iteration_bounds = array<i64: 1>, scalar_prefetch = 0 : i64, scratch_operands = 0 : i64, tpu.core_type = #tpu.core_type<tc>, window_params = [{transform_indices = @transform_0, window_bounds = array<i64: 1, 2048>}, {transform_indices = @transform_1, window_bounds = array<i64: 1, 2048>}]} {
    %c0 = arith.constant 0 : index
    %c0_0 = arith.constant 0 : index
    %0 = vector.load %arg1[%c0, %c0_0] : memref<1x2048xf32, #tpu.memory_space<vmem>>, vector<1x2048xf32>
    %cst = arith.constant -1.000000e+00 : f32
    %1 = vector.broadcast %cst : f32 to vector<1x2048xf32>
    %2 = arith.mulf %1, %0 : vector<1x2048xf32>
    %c0_1 = arith.constant 0 : index
    %c0_2 = arith.constant 0 : index
    %3 = vector.load %arg2[%c0_1, %c0_2] : memref<1x2048xf32, #tpu.memory_space<vmem>>, vector<1x2048xf32>
    tpu.vector_store %arg2[%c0_1, %c0_2], %2 {strides = array<i32>} : memref<1x2048xf32, #tpu.memory_space<vmem>>, vector<1x2048xf32>,
    return
  }
  func.func @transform_0(%arg0: i32) -> (i32, i32) {
    %c0_i32 = arith.constant 0 : i32
    %c0_i32_0 = arith.constant 0 : i32
    return %arg0, %c0_i32 : i32, i32
  }
  func.func @transform_1(%arg0: i32) -> (i32, i32) {
    %c0_i32 = arith.constant 0 : i32
    %c0_i32_0 = arith.constant 0 : i32
    return %arg0, %c0_i32 : i32, i32
  }
}

</mosaic_0001>

<bundles_post_ra>
// kernel: tpu_custom_call.1
= control target key start
LH: loop header
LB: loop body
LE: loop exit
PB: predicated region body
PF: predicated region fallthrough
CT: control target
= control target key end

     0   :  { %6 = vsyncpa [#allocation3], 0  ;;  %s106_s0 = inlined_call_operand.hbm [shape: f32[1,2048], index: 0, kind: input, shape index: {}]   ;;  %s107_s1 = inlined_call_operand.hbm [shape: f32[1,2048], index: 1, kind: output, shape index: {}]  }
   0x1   :  { %7 = vsyncpa [#allocation4], 0  ;;  %s88_s6 = smov [#allocation2]  }
   0x2   :  { %s14_s7 = sshll.u32 %s88_s6, 4  ;;  %s15_s7 = int_to_ptr.vmem [resolvable:$true] %s14_s7 }
   0x3   :  { %s52_s8 = scalar_lea.vmem %s15_s7, 256  ;;  %p57_p1 = scmp.lt.s32.totalorder %s15_s7, %s15_s7 }
   0x4   :  { %p53_p0 = scmp.ne.s32.totalorder %s15_s7, %s52_s8  ;;  %p58_p2 = scmp.lt.s32.totalorder %s52_s8, %s52_s8 }
   0x6   :  { %p59_p3 = por %p58_p2, %p57_p1 }
   0x8   :  { %p60_p4 = pnand %p59_p3, %p53_p0 }
   0xa   :  { %63 = shalt.err (!%p60_p4)
}
   0xb   :  { %17 = dma.hbm_to_vmem [thread:$0]  %s106_s0, 256, %s15_s7, [#allocation3]  }
   0xc   :  { %84 = dma.done.wait [#allocation3], 256  }
   0xd   :  { %85 = vsyncadd [#allocation3], 4294967040  ;;  %s89_s11 = smov [#allocation5]   ;;  %v21_v0 = vld [vmem:[#allocation2] sm:$0xff]  ;;  %v22_v1 = vld [vmem:[#allocation2 + $0x8] sm:$0xff] }
   0xe   :  { %s33_s12 = sshll.u32 %s89_s11, 4  ;;  %v23_v2 = vmul.f32 -1.0, %v21_v0  ;;  %v24_v3 = vmul.f32 -1.0, %v22_v1  ;;  %s34_s12 = int_to_ptr.vmem [resolvable:$true] %s33_s12 }
   0xf   :  { %s64_s13 = scalar_lea.vmem %s34_s12, 256  ;;  %p69_p6 = scmp.lt.s32.totalorder %s34_s12, %s34_s12 }
  0x10   :  { %25 = vst [vmem:[#allocation5] sm:$0xff] %v23_v2  ;;  %26 = vst [vmem:[#allocation5 + $0x8] sm:$0xff] %v24_v3  ;;  %p65_p5 = scmp.ne.s32.totalorder %s34_s12, %s64_s13  ;;  %p70_p7 = scmp.lt.s32.totalorder %s64_s13, %s64_s13 }
  0x12   :  { %p71_p8 = por %p70_p7, %p69_p6 }
  0x14   :  { %p72_p9 = pnand %p71_p8, %p65_p5 }
  0x16   :  { %75 = shalt.err (!%p72_p9)
}
  0x17   :  { %36 = dma.vmem_to_hbm [thread:$0]  %s34_s12, 256, %s107_s1, [#allocation4]  }
  0x18   :  { %86 = dma.done.wait [#allocation4], 256  }
  0x19   :  { %87 = vsyncadd [#allocation4], 4294967040 }
  0x1a   :  { %40 = vsyncpa [#allocation3], 1 }
  0x1b   :  { %41 = vsyncpa [#allocation4], 1 }

</bundles_post_ra>
